<compile_context>
chip_gen: v7x
topology: tpu7x:2x2x1
jax: 0.10.0
libtpu: 0.0.40
codegen_flags: <defaults>
</compile_context>

<pallas_src>
import functools

import jax
import jax.numpy as jnp
from jax.experimental import pallas as pl
from jax.experimental.pallas import tpu as pltpu

EMBED_DIM = 32           # args.embed_dim
KG_L2_LAMBDA = 1e-5      # args.kg_l2loss_lambda
LEAKY_SLOPE = 0.01       # F.leaky_relu default negative_slope

_LANE = 128              # TPU lane width
_BATCH_BLOCK = 2048      # rows per grid step (fits easily in VMEM on v5e/v6e/v7x)


def _round_up(x, m):
    return ((x + m - 1) // m) * m


def _grid_params(batch):
    """Return (padded_batch, block, num_blocks); block is lane-aligned."""
    if batch <= _BATCH_BLOCK:
        b_pad = _round_up(max(batch, 1), _LANE)
        return b_pad, b_pad, 1
    b_pad = _round_up(batch, _BATCH_BLOCK)
    return b_pad, _BATCH_BLOCK, b_pad // _BATCH_BLOCK


def _cross_terms(hT, rT, hw1, hw2, rw1, rw2, hb, rb):
    """Rank-1 form of the SUR cross terms (transposed layout).

    hT, rT           : (D, Bb)
    hw1/hw2/rw1/rw2  : (D, 1)
    hb, rb           : (D, 1)

    Equivalent to the reference
      sem      = bmm(h[:, :, None], r[:, None, :])         # (B, D, D)
      cross_h  = sem @ hw1 + sem^T @ rw2 + hb
      cross_r  = sem @ hw2 + sem^T @ rw1 + rb
    but with the (B, D, D) intermediates eliminated algebraically:
      cross_h[b, i] = h[b, i] * <r[b], hw1> + r[b, i] * <h[b], rw2> + hb[i]
      cross_r[b, i] = h[b, i] * <r[b], hw2> + r[b, i] * <h[b], rw1> + rb[i]
    """
    s_r_hw1 = jnp.sum(rT * hw1, axis=0, keepdims=True)   # (1, Bb)
    s_r_hw2 = jnp.sum(rT * hw2, axis=0, keepdims=True)
    s_h_rw1 = jnp.sum(hT * rw1, axis=0, keepdims=True)
    s_h_rw2 = jnp.sum(hT * rw2, axis=0, keepdims=True)
    cross_hT = hT * s_r_hw1 + rT * s_h_rw2 + hb           # (D, Bb)
    cross_rT = hT * s_r_hw2 + rT * s_h_rw1 + rb           # (D, Bb)
    return cross_hT, cross_rT


def _kg_loss_kernel(h_ref, r_ref, pos_ref, neg_ref,
                    hw1_ref, hw2_ref, rw1_ref, rw2_ref, hb_ref, rb_ref,
                    wtop_ref, wbot_ref, o_ref, *, batch):
    hT = h_ref[...]            # (D, Bb)
    rT = r_ref[...]
    posT = pos_ref[...]
    negT = neg_ref[...]
    bb = hT.shape[1]

    cross_hT, cross_rT = _cross_terms(hT, rT,
                                      hw1_ref[...], hw2_ref[...],
                                      rw1_ref[...], rw2_ref[...],
                                      hb_ref[...], rb_ref[...])

    # cat([cross_h, cross_r], 1) @ W  ==  cross_h @ W[:D] + cross_r @ W[D:]
    # (transposed: W_top^T @ cross_hT + W_bot^T @ cross_rT) -> no lane concat.
    predT = (jnp.dot(wtop_ref[...], cross_hT, preferred_element_type=jnp.float32)
             + jnp.dot(wbot_ref[...], cross_rT, preferred_element_type=jnp.float32))

    pos_score = jnp.sum(predT * posT, axis=0, keepdims=True)   # (1, Bb)
    neg_score = jnp.sum(predT * negT, axis=0, keepdims=True)   # (1, Bb)
    diff = pos_score - neg_score
    # logsigmoid(x) = min(x, 0) - log1p(exp(-|x|))
    log_sig = jnp.minimum(diff, 0.0) - jnp.log1p(jnp.exp(-jnp.abs(diff)))

    # Mask out padded batch columns (batch is a static Python int).
    lane = jax.lax.broadcasted_iota(jnp.int32, (1, bb), 1)
    gidx = pl.program_id(0) * bb + lane
    maskf = (gidx < batch).astype(jnp.float32)                 # (1, Bb)

    kg_sum = jnp.sum(-log_sig * maskf, axis=1, keepdims=True)  # (1, 1)

    def _l2_sum(xT):
        # reference regularizes the cross terms + pos/neg embeddings
        per_row = jnp.sum(xT * xT, axis=0, keepdims=True) * 0.5   # (1, Bb)
        return jnp.sum(per_row * maskf, axis=1, keepdims=True)    # (1, 1)

    l2 = (_l2_sum(cross_hT) + _l2_sum(cross_rT)
          + _l2_sum(posT) + _l2_sum(negT))

    block_loss = (kg_sum + KG_L2_LAMBDA * l2) * (1.0 / batch)

    @pl.when(pl.program_id(0) == 0)
    def _():
        o_ref[...] = jnp.zeros_like(o_ref)

    o_ref[...] += block_loss


def _update_att_kernel(h_ref, r_ref, t_ref,
                       hw1_ref, hw2_ref, rw1_ref, rw2_ref, hb_ref, rb_ref,
                       wtop_ref, wbot_ref, o_ref):
    hT = h_ref[...]            # (D, Bb)
    rT = r_ref[...]
    tT = t_ref[...]

    cross_hT, cross_rT = _cross_terms(hT, rT,
                                      hw1_ref[...], hw2_ref[...],
                                      rw1_ref[...], rw2_ref[...],
                                      hb_ref[...], rb_ref[...])

    predT = (jnp.dot(wtop_ref[...], cross_hT, preferred_element_type=jnp.float32)
             + jnp.dot(wbot_ref[...], cross_rT, preferred_element_type=jnp.float32))

    x = predT * tT
    x = jnp.where(x >= 0.0, x, LEAKY_SLOPE * x)                # leaky_relu
    # lane-dense (1, Bb) output -> unmasked dense stores
    o_ref[...] = jnp.sum(x, axis=0, keepdims=True)


def _param_kernel_args(params, d):
    w = params["sem_trans_w"]                 # (2D, D)
    return (params["h_trans_w1"], params["h_trans_w2"],
            params["r_trans_w1"], params["r_trans_w2"],
            params["h_bias_b"], params["r_bias_b"],
            w[:d, :].T, w[d:, :].T)           # (D, D) transposed halves


def _prep_cols(table, ids, b_pad):
    """Gather rows, transpose to (D, B) and zero-pad lanes up to b_pad."""
    embT = table[ids].T                       # (D, B)
    b = embT.shape[1]
    if b_pad != b:
        embT = jnp.pad(embT, ((0, 0), (0, b_pad - b)))
    return embT


def _param_specs(p_args):
    # Tiny parameter blocks: constant index_map -> resident, no per-step refetch.
    return [pl.BlockSpec(p.shape, lambda i: (0, 0)) for p in p_args]


@jax.jit
def calc_kg_loss(params, h_ids, r_ids, pos_t_ids, neg_t_ids):
    d = params["entity_embed"].shape[1]
    batch = h_ids.shape[0]
    b_pad, bb, n_blocks = _grid_params(batch)

    # Embedding gathers stay in plain JAX (glue); the SUR math is in-kernel.
    hT = _prep_cols(params["entity_embed"], h_ids, b_pad)
    rT = _prep_cols(params["relation_embed"], r_ids, b_pad)
    posT = _prep_cols(params["entity_embed"], pos_t_ids, b_pad)
    negT = _prep_cols(params["entity_embed"], neg_t_ids, b_pad)

    p_args = _param_kernel_args(params, d)
    batch_spec = pl.BlockSpec((d, bb), lambda i: (0, i))

    out = pl.pallas_call(
        functools.partial(_kg_loss_kernel, batch=batch),
        out_shape=jax.ShapeDtypeStruct((1, 1), jnp.float32),
        grid=(n_blocks,),
        in_specs=[batch_spec] * 4 + _param_specs(p_args),
        out_specs=pl.BlockSpec((1, 1), lambda i: (0, 0)),
        compiler_params=pltpu.CompilerParams(
            dimension_semantics=("arbitrary",)),
    )(hT, rT, posT, negT, *p_args)
    return out[0, 0]


@jax.jit
def update_attention(params, h_batch, t_batch, r_batch):
    d = params["entity_embed"].shape[1]
    batch = h_batch.shape[0]
    b_pad, bb, n_blocks = _grid_params(batch)

    hT = _prep_cols(params["entity_embed"], h_batch, b_pad)
    rT = _prep_cols(params["relation_embed"], r_batch, b_pad)
    tT = _prep_cols(params["entity_embed"], t_batch, b_pad)

    p_args = _param_kernel_args(params, d)
    batch_spec = pl.BlockSpec((d, bb), lambda i: (0, i))

    out = pl.pallas_call(
        _update_att_kernel,
        out_shape=jax.ShapeDtypeStruct((1, b_pad), jnp.float32),
        grid=(n_blocks,),
        in_specs=[batch_spec] * 3 + _param_specs(p_args),
        out_specs=pl.BlockSpec((1, bb), lambda i: (0, i)),
        compiler_params=pltpu.CompilerParams(
            dimension_semantics=("parallel",)),
    )(hT, rT, tT, *p_args)
    return out[0, :batch]


# ---------------------------------------------------------------------------
# Parameters

def _xavier_uniform(key, shape):
    fan_in, fan_out = shape[0], shape[1]
    a = jnp.sqrt(6.0 / (fan_in + fan_out))
    return jax.random.uniform(key, shape, jnp.float32, -a, a)


def init_params(key, n_entities, n_relations, embed_dim):
    k1, k2, k3 = jax.random.split(key, 3)
    ones_col = jnp.ones((embed_dim, 1), jnp.float32)
    zeros_col = jnp.zeros((embed_dim, 1), jnp.float32)
    return {
        "entity_embed": _xavier_uniform(k1, (n_entities, embed_dim)),
        "relation_embed": _xavier_uniform(k2, (n_relations, embed_dim)),
        "sem_trans_w": _xavier_uniform(k3, (2 * embed_dim, embed_dim)),
        # nn.init.constant_(w, 1) / constant_(b, 0); stored as (D, 1) columns.
        "h_trans_w1": ones_col, "h_trans_w2": ones_col,
        "r_trans_w1": ones_col, "r_trans_w2": ones_col,
        "h_bias_b": zeros_col, "r_bias_b": zeros_col,
    }


# ---------------------------------------------------------------------------
# Pure-JAX references (mirror the PyTorch formulation, incl. the bmm outer
# product) used to validate the rank-1 Pallas kernels.

def _reference_calc_sur(params, h_emb, r_emb):
    hw1 = params["h_trans_w1"][:, 0]; hw2 = params["h_trans_w2"][:, 0]
    rw1 = params["r_trans_w1"][:, 0]; rw2 = params["r_trans_w2"][:, 0]
    hb = params["h_bias_b"][:, 0]; rb = params["r_bias_b"][:, 0]
    sem = h_emb[:, :, None] * r_emb[:, None, :]
    cross_h = (jnp.einsum("bij,j->bi", sem, hw1)
               + jnp.einsum("bji,j->bi", sem, rw2) + hb)
    cross_r = (jnp.einsum("bij,j->bi", sem, hw2)
               + jnp.einsum("bji,j->bi", sem, rw1) + rb)
    return cross_h, cross_r


def _reference_kg_loss(params, h_ids, r_ids, pos_ids, neg_ids):
    h = params["entity_embed"][h_ids]
    r = params["relation_embed"][r_ids]
    pos = params["entity_embed"][pos_ids]
    neg = params["entity_embed"][neg_ids]
    ch, cr = _reference_calc_sur(params, h, r)
    pred = jnp.concatenate([ch, cr], axis=1) @ params["sem_trans_w"]
    pos_s = jnp.sum(pred * pos, axis=1)
    neg_s = jnp.sum(pred * neg, axis=1)
    kg = jnp.mean(-jax.nn.log_sigmoid(pos_s - neg_s))
    l2 = lambda x: jnp.mean(jnp.sum(x * x, axis=1) / 2.0)
    return kg + KG_L2_LAMBDA * (l2(ch) + l2(cr) + l2(pos) + l2(neg))


def _reference_update_att(params, h_b, t_b, r_b):
    h = params["entity_embed"][h_b]
    r = params["relation_embed"][r_b]
    t = params["entity_embed"][t_b]
    ch, cr = _reference_calc_sur(params, h, r)
    pred = jnp.concatenate([ch, cr], axis=1) @ params["sem_trans_w"]
    return jnp.sum(jax.nn.leaky_relu(pred * t, negative_slope=LEAKY_SLOPE), axis=1)


if __name__ == "__main__":
    n_entities, n_relations = 64, 8

    key = jax.random.PRNGKey(0)
    pkey, ikey = jax.random.split(key)
    params = init_params(pkey, n_entities, n_relations, EMBED_DIM)

    # batch=8 exercises the single padded block; batch=3000 exercises the
    # multi-block grid (padding + masking + loss accumulation).
    for kg_batch in (8, 3000):
        ks = jax.random.split(jax.random.fold_in(ikey, kg_batch), 4)
        h_ids = jax.random.randint(ks[0], (kg_batch,), 0, n_entities)
        r_ids = jax.random.randint(ks[1], (kg_batch,), 0, n_relations)
        pos_t_ids = jax.random.randint(ks[2], (kg_batch,), 0, n_entities)
        neg_t_ids = jax.random.randint(ks[3], (kg_batch,), 0, n_entities)

        loss = calc_kg_loss(params, h_ids, r_ids, pos_t_ids, neg_t_ids)
        att = update_attention(params, h_ids, pos_t_ids, r_ids)
        jax.block_until_ready((loss, att))

        assert loss.shape == () and att.shape == (kg_batch,)

        loss_ref = _reference_kg_loss(params, h_ids, r_ids, pos_t_ids, neg_t_ids)
        att_ref = _reference_update_att(params, h_ids, pos_t_ids, r_ids)
        assert jnp.allclose(loss, loss_ref, rtol=1e-3, atol=1e-3)
        assert jnp.allclose(att, att_ref, rtol=1e-3, atol=1e-3)

    print("KERNEL_OK")
</pallas_src>

<mosaic_0001>
module attributes {stable_mosaic.version = 11 : i64} {
  func.func @_kg_loss_kernel(%arg0: i32, %arg1: memref<32x128xf32, #tpu.memory_space<vmem>>, %arg2: memref<32x128xf32, #tpu.memory_space<vmem>>, %arg3: memref<32x128xf32, #tpu.memory_space<vmem>>, %arg4: memref<32x128xf32, #tpu.memory_space<vmem>>, %arg5: memref<32x1xf32, #tpu.memory_space<vmem>>, %arg6: memref<32x1xf32, #tpu.memory_space<vmem>>, %arg7: memref<32x1xf32, #tpu.memory_space<vmem>>, %arg8: memref<32x1xf32, #tpu.memory_space<vmem>>, %arg9: memref<32x1xf32, #tpu.memory_space<vmem>>, %arg10: memref<32x1xf32, #tpu.memory_space<vmem>>, %arg11: memref<32x32xf32, #tpu.memory_space<vmem>>, %arg12: memref<32x32xf32, #tpu.memory_space<vmem>>, %arg13: memref<1x1xf32, #tpu.memory_space<vmem>>) attributes {dimension_semantics = [#tpu.dimension_semantics<arbitrary>], iteration_bounds = array<i64: 1>, scalar_prefetch = 0 : i64, scratch_operands = 0 : i64, tpu.core_type = #tpu.core_type<tc>, window_params = [{transform_indices = @transform_0, window_bounds = array<i64: 32, 128>}, {transform_indices = @transform_1, window_bounds = array<i64: 32, 128>}, {transform_indices = @transform_2, window_bounds = array<i64: 32, 128>}, {transform_indices = @transform_3, window_bounds = array<i64: 32, 128>}, {pipeline_mode = #tpu.pipeline_mode<synchronous>, transform_indices = @transform_4, window_bounds = array<i64: 32, 1>}, {pipeline_mode = #tpu.pipeline_mode<synchronous>, transform_indices = @transform_5, window_bounds = array<i64: 32, 1>}, {pipeline_mode = #tpu.pipeline_mode<synchronous>, transform_indices = @transform_6, window_bounds = array<i64: 32, 1>}, {pipeline_mode = #tpu.pipeline_mode<synchronous>, transform_indices = @transform_7, window_bounds = array<i64: 32, 1>}, {pipeline_mode = #tpu.pipeline_mode<synchronous>, transform_indices = @transform_8, window_bounds = array<i64: 32, 1>}, {pipeline_mode = #tpu.pipeline_mode<synchronous>, transform_indices = @transform_9, window_bounds = array<i64: 32, 1>}, {pipeline_mode = #tpu.pipeline_mode<synchronous>, transform_indices = @transform_10, window_bounds = array<i64: 32, 32>}, {pipeline_mode = #tpu.pipeline_mode<synchronous>, transform_indices = @transform_11, window_bounds = array<i64: 32, 32>}, {pipeline_mode = #tpu.pipeline_mode<synchronous>, transform_indices = @transform_12, window_bounds = array<i64: 1, 1>}]} {
    %c0 = arith.constant 0 : index
    %c0_0 = arith.constant 0 : index
    %0 = vector.load %arg1[%c0, %c0_0] : memref<32x128xf32, #tpu.memory_space<vmem>>, vector<32x128xf32>
    %c0_1 = arith.constant 0 : index
    %c0_2 = arith.constant 0 : index
    %1 = vector.load %arg2[%c0_1, %c0_2] : memref<32x128xf32, #tpu.memory_space<vmem>>, vector<32x128xf32>
    %c0_3 = arith.constant 0 : index
    %c0_4 = arith.constant 0 : index
    %2 = vector.load %arg3[%c0_3, %c0_4] : memref<32x128xf32, #tpu.memory_space<vmem>>, vector<32x128xf32>
    %c0_5 = arith.constant 0 : index
    %c0_6 = arith.constant 0 : index
    %3 = vector.load %arg4[%c0_5, %c0_6] : memref<32x128xf32, #tpu.memory_space<vmem>>, vector<32x128xf32>
    %c0_7 = arith.constant 0 : index
    %c0_8 = arith.constant 0 : index
    %4 = vector.load %arg5[%c0_7, %c0_8] : memref<32x1xf32, #tpu.memory_space<vmem>>, vector<32x1xf32>
    %c0_9 = arith.constant 0 : index
    %c0_10 = arith.constant 0 : index
    %5 = vector.load %arg6[%c0_9, %c0_10] : memref<32x1xf32, #tpu.memory_space<vmem>>, vector<32x1xf32>
    %c0_11 = arith.constant 0 : index
    %c0_12 = arith.constant 0 : index
    %6 = vector.load %arg7[%c0_11, %c0_12] : memref<32x1xf32, #tpu.memory_space<vmem>>, vector<32x1xf32>
    %c0_13 = arith.constant 0 : index
    %c0_14 = arith.constant 0 : index
    %7 = vector.load %arg8[%c0_13, %c0_14] : memref<32x1xf32, #tpu.memory_space<vmem>>, vector<32x1xf32>
    %c0_15 = arith.constant 0 : index
    %c0_16 = arith.constant 0 : index
    %8 = vector.load %arg9[%c0_15, %c0_16] : memref<32x1xf32, #tpu.memory_space<vmem>>, vector<32x1xf32>
    %c0_17 = arith.constant 0 : index
    %c0_18 = arith.constant 0 : index
    %9 = vector.load %arg10[%c0_17, %c0_18] : memref<32x1xf32, #tpu.memory_space<vmem>>, vector<32x1xf32>
    %10 = vector.broadcast %4 : vector<32x1xf32> to vector<32x128xf32>
    %11 = arith.mulf %1, %10 : vector<32x128xf32>
    %cst = arith.constant dense<0.000000e+00> : vector<128xf32>
    %12 = vector.multi_reduction <add>, %11, %cst [0] : vector<32x128xf32> to vector<128xf32>
    %13 = vector.shape_cast %12 : vector<128xf32> to vector<1x128xf32>
    %14 = vector.broadcast %5 : vector<32x1xf32> to vector<32x128xf32>
    %15 = arith.mulf %1, %14 : vector<32x128xf32>
    %cst_19 = arith.constant dense<0.000000e+00> : vector<128xf32>
    %16 = vector.multi_reduction <add>, %15, %cst_19 [0] : vector<32x128xf32> to vector<128xf32>
    %17 = vector.shape_cast %16 : vector<128xf32> to vector<1x128xf32>
    %18 = vector.broadcast %6 : vector<32x1xf32> to vector<32x128xf32>
    %19 = arith.mulf %0, %18 : vector<32x128xf32>
    %cst_20 = arith.constant dense<0.000000e+00> : vector<128xf32>
    %20 = vector.multi_reduction <add>, %19, %cst_20 [0] : vector<32x128xf32> to vector<128xf32>
    %21 = vector.shape_cast %20 : vector<128xf32> to vector<1x128xf32>
    %22 = vector.broadcast %7 : vector<32x1xf32> to vector<32x128xf32>
    %23 = arith.mulf %0, %22 : vector<32x128xf32>
    %cst_21 = arith.constant dense<0.000000e+00> : vector<128xf32>
    %24 = vector.multi_reduction <add>, %23, %cst_21 [0] : vector<32x128xf32> to vector<128xf32>
    %25 = vector.shape_cast %24 : vector<128xf32> to vector<1x128xf32>
    %26 = vector.broadcast %13 : vector<1x128xf32> to vector<32x128xf32>
    %27 = arith.mulf %0, %26 : vector<32x128xf32>
    %28 = vector.broadcast %25 : vector<1x128xf32> to vector<32x128xf32>
    %29 = arith.mulf %1, %28 : vector<32x128xf32>
    %30 = arith.addf %27, %29 : vector<32x128xf32>
    %31 = vector.broadcast %8 : vector<32x1xf32> to vector<32x128xf32>
    %32 = arith.addf %30, %31 : vector<32x128xf32>
    %33 = vector.broadcast %17 : vector<1x128xf32> to vector<32x128xf32>
    %34 = arith.mulf %0, %33 : vector<32x128xf32>
    %35 = vector.broadcast %21 : vector<1x128xf32> to vector<32x128xf32>
    %36 = arith.mulf %1, %35 : vector<32x128xf32>
    %37 = arith.addf %34, %36 : vector<32x128xf32>
    %38 = vector.broadcast %9 : vector<32x1xf32> to vector<32x128xf32>
    %39 = arith.addf %37, %38 : vector<32x128xf32>
    %c0_22 = arith.constant 0 : index
    %c0_23 = arith.constant 0 : index
    %40 = vector.load %arg11[%c0_22, %c0_23] : memref<32x32xf32, #tpu.memory_space<vmem>>, vector<32x32xf32>
    %cst_24 = arith.constant dense<0.000000e+00> : vector<32x128xf32>
    %41 = tpu.matmul %40, %32, %cst_24 {dimension_numbers = #tpu.dot_dimension_numbers<[1], [0], [0], [1], [0, 0, 1, 1], [], []>} : vector<32x32xf32>, vector<32x128xf32>, vector<32x128xf32> -> vector<32x128xf32>
    %c0_25 = arith.constant 0 : index
    %c0_26 = arith.constant 0 : index
    %42 = vector.load %arg12[%c0_25, %c0_26] : memref<32x32xf32, #tpu.memory_space<vmem>>, vector<32x32xf32>
    %cst_27 = arith.constant dense<0.000000e+00> : vector<32x128xf32>
    %43 = tpu.matmul %42, %39, %cst_27 {dimension_numbers = #tpu.dot_dimension_numbers<[1], [0], [0], [1], [0, 0, 1, 1], [], []>} : vector<32x32xf32>, vector<32x128xf32>, vector<32x128xf32> -> vector<32x128xf32>
    %44 = arith.addf %41, %43 : vector<32x128xf32>
    %45 = arith.mulf %44, %2 : vector<32x128xf32>
    %cst_28 = arith.constant dense<0.000000e+00> : vector<128xf32>
    %46 = vector.multi_reduction <add>, %45, %cst_28 [0] : vector<32x128xf32> to vector<128xf32>
    %47 = vector.shape_cast %46 : vector<128xf32> to vector<1x128xf32>
    %48 = arith.mulf %44, %3 : vector<32x128xf32>
    %cst_29 = arith.constant dense<0.000000e+00> : vector<128xf32>
    %49 = vector.multi_reduction <add>, %48, %cst_29 [0] : vector<32x128xf32> to vector<128xf32>
    %50 = vector.shape_cast %49 : vector<128xf32> to vector<1x128xf32>
    %51 = arith.subf %47, %50 : vector<1x128xf32>
    %cst_30 = arith.constant 0.000000e+00 : f32
    %52 = vector.broadcast %cst_30 : f32 to vector<1x128xf32>
    %53 = arith.minimumf %51, %52 : vector<1x128xf32>
    %54 = math.absf %51 : vector<1x128xf32>
    %cst_31 = arith.constant 0.000000e+00 : f32
    %55 = vector.broadcast %cst_31 : f32 to vector<1x128xf32>
    %56 = arith.subf %55, %54 : vector<1x128xf32>
    %57 = math.exp %56 : vector<1x128xf32>
    %58 = math.log1p %57 : vector<1x128xf32>
    %59 = arith.subf %53, %58 : vector<1x128xf32>
    %60 = tpu.iota {dimensions = array<i32: 1>} : vector<1x128xi32>
    %c128_i32 = arith.constant 128 : i32
    %61 = arith.muli %arg0, %c128_i32 : i32
    %62 = vector.broadcast %61 : i32 to vector<1x128xi32>
    %63 = arith.addi %62, %60 : vector<1x128xi32>
    %c8_i32 = arith.constant 8 : i32
    %64 = vector.broadcast %c8_i32 : i32 to vector<1x128xi32>
    %65 = arith.cmpi slt, %63, %64 : vector<1x128xi32>
    %66 = arith.extui %65 : vector<1x128xi1> to vector<1x128xi32>
    %67 = arith.sitofp %66 : vector<1x128xi32> to vector<1x128xf32>
    %cst_32 = arith.constant 0.000000e+00 : f32
    %68 = vector.broadcast %cst_32 : f32 to vector<1x128xf32>
    %69 = arith.subf %68, %59 : vector<1x128xf32>
    %70 = arith.mulf %69, %67 : vector<1x128xf32>
    %cst_33 = arith.constant dense<0.000000e+00> : vector<1xf32>
    %71 = vector.multi_reduction <add>, %70, %cst_33 [1] : vector<1x128xf32> to vector<1xf32>
    %72 = vector.shape_cast %71 : vector<1xf32> to vector<1x1xf32>
    %73 = arith.mulf %32, %32 : vector<32x128xf32>
    %cst_34 = arith.constant dense<0.000000e+00> : vector<128xf32>
    %74 = vector.multi_reduction <add>, %73, %cst_34 [0] : vector<32x128xf32> to vector<128xf32>
    %75 = vector.shape_cast %74 : vector<128xf32> to vector<1x128xf32>
    %cst_35 = arith.constant 5.000000e-01 : f32
    %76 = vector.broadcast %cst_35 : f32 to vector<1x128xf32>
    %77 = arith.mulf %75, %76 : vector<1x128xf32>
    %78 = arith.mulf %77, %67 : vector<1x128xf32>
    %cst_36 = arith.constant dense<0.000000e+00> : vector<1xf32>
    %79 = vector.multi_reduction <add>, %78, %cst_36 [1] : vector<1x128xf32> to vector<1xf32>
    %80 = vector.shape_cast %79 : vector<1xf32> to vector<1x1xf32>
    %81 = arith.mulf %39, %39 : vector<32x128xf32>
    %cst_37 = arith.constant dense<0.000000e+00> : vector<128xf32>
    %82 = vector.multi_reduction <add>, %81, %cst_37 [0] : vector<32x128xf32> to vector<128xf32>
    %83 = vector.shape_cast %82 : vector<128xf32> to vector<1x128xf32>
    %cst_38 = arith.constant 5.000000e-01 : f32
    %84 = vector.broadcast %cst_38 : f32 to vector<1x128xf32>
    %85 = arith.mulf %83, %84 : vector<1x128xf32>
    %86 = arith.mulf %85, %67 : vector<1x128xf32>
    %cst_39 = arith.constant dense<0.000000e+00> : vector<1xf32>
    %87 = vector.multi_reduction <add>, %86, %cst_39 [1] : vector<1x128xf32> to vector<1xf32>
    %88 = vector.shape_cast %87 : vector<1xf32> to vector<1x1xf32>
    %89 = arith.addf %80, %88 : vector<1x1xf32>
    %90 = arith.mulf %2, %2 : vector<32x128xf32>
    %cst_40 = arith.constant dense<0.000000e+00> : vector<128xf32>
    %91 = vector.multi_reduction <add>, %90, %cst_40 [0] : vector<32x128xf32> to vector<128xf32>
    %92 = vector.shape_cast %91 : vector<128xf32> to vector<1x128xf32>
    %cst_41 = arith.constant 5.000000e-01 : f32
    %93 = vector.broadcast %cst_41 : f32 to vector<1x128xf32>
    %94 = arith.mulf %92, %93 : vector<1x128xf32>
    %95 = arith.mulf %94, %67 : vector<1x128xf32>
    %cst_42 = arith.constant dense<0.000000e+00> : vector<1xf32>
    %96 = vector.multi_reduction <add>, %95, %cst_42 [1] : vector<1x128xf32> to vector<1xf32>
    %97 = vector.shape_cast %96 : vector<1xf32> to vector<1x1xf32>
    %98 = arith.addf %89, %97 : vector<1x1xf32>
    %99 = arith.mulf %3, %3 : vector<32x128xf32>
    %cst_43 = arith.constant dense<0.000000e+00> : vector<128xf32>
    %100 = vector.multi_reduction <add>, %99, %cst_43 [0] : vector<32x128xf32> to vector<128xf32>
    %101 = vector.shape_cast %100 : vector<128xf32> to vector<1x128xf32>
    %cst_44 = arith.constant 5.000000e-01 : f32
    %102 = vector.broadcast %cst_44 : f32 to vector<1x128xf32>
    %103 = arith.mulf %101, %102 : vector<1x128xf32>
    %104 = arith.mulf %103, %67 : vector<1x128xf32>
    %cst_45 = arith.constant dense<0.000000e+00> : vector<1xf32>
    %105 = vector.multi_reduction <add>, %104, %cst_45 [1] : vector<1x128xf32> to vector<1xf32>
    %106 = vector.shape_cast %105 : vector<1xf32> to vector<1x1xf32>
    %107 = arith.addf %98, %106 : vector<1x1xf32>
    %cst_46 = arith.constant 9.99999974E-6 : f32
    %108 = vector.broadcast %cst_46 : f32 to vector<1x1xf32>
    %109 = arith.mulf %108, %107 : vector<1x1xf32>
    %110 = arith.addf %72, %109 : vector<1x1xf32>
    %cst_47 = arith.constant 1.250000e-01 : f32
    %111 = vector.broadcast %cst_47 : f32 to vector<1x1xf32>
    %112 = arith.mulf %110, %111 : vector<1x1xf32>
    %c0_i32 = arith.constant 0 : i32
    %113 = arith.cmpi eq, %arg0, %c0_i32 : i32
    %114 = arith.extui %113 : i1 to i32
    %c0_i32_48 = arith.constant 0 : i32
    %115 = arith.cmpi ne, %114, %c0_i32_48 : i32
    scf.if %115 {
      %cst_53 = arith.constant 0.000000e+00 : f32
      %119 = vector.broadcast %cst_53 : f32 to vector<1x1xf32>
      %c0_54 = arith.constant 0 : index
      %c0_55 = arith.constant 0 : index
      %120 = vector.load %arg13[%c0_54, %c0_55] : memref<1x1xf32, #tpu.memory_space<vmem>>, vector<1x1xf32>
      tpu.vector_store %arg13[%c0_54, %c0_55], %119 {strides = array<i32>} : memref<1x1xf32, #tpu.memory_space<vmem>>, vector<1x1xf32>,
    } else {
    }
    %c0_49 = arith.constant 0 : index
    %c0_50 = arith.constant 0 : index
    %116 = vector.load %arg13[%c0_49, %c0_50] : memref<1x1xf32, #tpu.memory_space<vmem>>, vector<1x1xf32>
    %117 = arith.addf %116, %112 : vector<1x1xf32>
    %c0_51 = arith.constant 0 : index
    %c0_52 = arith.constant 0 : index
    %118 = vector.load %arg13[%c0_51, %c0_52] : memref<1x1xf32, #tpu.memory_space<vmem>>, vector<1x1xf32>
    tpu.vector_store %arg13[%c0_51, %c0_52], %117 {strides = array<i32>} : memref<1x1xf32, #tpu.memory_space<vmem>>, vector<1x1xf32>,
    return
  }
  func.func @transform_0(%arg0: i32) -> (i32, i32) {
    %c0_i32 = arith.constant 0 : i32
    %c0_i32_0 = arith.constant 0 : i32
    return %c0_i32, %arg0 : i32, i32
  }
  func.func @transform_1(%arg0: i32) -> (i32, i32) {
    %c0_i32 = arith.constant 0 : i32
    %c0_i32_0 = arith.constant 0 : i32
    return %c0_i32, %arg0 : i32, i32
  }
  func.func @transform_2(%arg0: i32) -> (i32, i32) {
    %c0_i32 = arith.constant 0 : i32
    %c0_i32_0 = arith.constant 0 : i32
    return %c0_i32, %arg0 : i32, i32
  }
  func.func @transform_3(%arg0: i32) -> (i32, i32) {
    %c0_i32 = arith.constant 0 : i32
    %c0_i32_0 = arith.constant 0 : i32
    return %c0_i32, %arg0 : i32, i32
  }
  func.func @transform_4(%arg0: i32) -> (i32, i32) {
    %c0_i32 = arith.constant 0 : i32
    %c0_i32_0 = arith.constant 0 : i32
    %c0_i32_1 = arith.constant 0 : i32
    return %c0_i32, %c0_i32_0 : i32, i32
  }
  func.func @transform_5(%arg0: i32) -> (i32, i32) {
    %c0_i32 = arith.constant 0 : i32
    %c0_i32_0 = arith.constant 0 : i32
    %c0_i32_1 = arith.constant 0 : i32
    return %c0_i32, %c0_i32_0 : i32, i32
  }
  func.func @transform_6(%arg0: i32) -> (i32, i32) {
    %c0_i32 = arith.constant 0 : i32
    %c0_i32_0 = arith.constant 0 : i32
    %c0_i32_1 = arith.constant 0 : i32
    return %c0_i32, %c0_i32_0 : i32, i32
  }
  func.func @transform_7(%arg0: i32) -> (i32, i32) {
    %c0_i32 = arith.constant 0 : i32
    %c0_i32_0 = arith.constant 0 : i32
    %c0_i32_1 = arith.constant 0 : i32
    return %c0_i32, %c0_i32_0 : i32, i32
  }
  func.func @transform_8(%arg0: i32) -> (i32, i32) {
    %c0_i32 = arith.constant 0 : i32
    %c0_i32_0 = arith.constant 0 : i32
    %c0_i32_1 = arith.constant 0 : i32
    return %c0_i32, %c0_i32_0 : i32, i32
  }
  func.func @transform_9(%arg0: i32) -> (i32, i32) {
    %c0_i32 = arith.constant 0 : i32
    %c0_i32_0 = arith.constant 0 : i32
    %c0_i32_1 = arith.constant 0 : i32
    return %c0_i32, %c0_i32_0 : i32, i32
  }
  func.func @transform_10(%arg0: i32) -> (i32, i32) {
    %c0_i32 = arith.constant 0 : i32
    %c0_i32_0 = arith.constant 0 : i32
    %c0_i32_1 = arith.constant 0 : i32
    return %c0_i32, %c0_i32_0 : i32, i32
  }
  func.func @transform_11(%arg0: i32) -> (i32, i32) {
    %c0_i32 = arith.constant 0 : i32
    %c0_i32_0 = arith.constant 0 : i32
    %c0_i32_1 = arith.constant 0 : i32
    return %c0_i32, %c0_i32_0 : i32, i32
  }
  func.func @transform_12(%arg0: i32) -> (i32, i32) {
    %c0_i32 = arith.constant 0 : i32
    %c0_i32_0 = arith.constant 0 : i32
    %c0_i32_1 = arith.constant 0 : i32
    return %c0_i32, %c0_i32_0 : i32, i32
  }
}

</mosaic_0001>

<bundles_post_ra>
// kernel: calc_kg_loss.1
= control target key start
LH: loop header
LB: loop body
LE: loop exit
PB: predicated region body
PF: predicated region fallthrough
CT: control target
= control target key end

     0   :  { %v747_v2 = vmov 0   ;;  %s1080_s0 = inlined_call_operand.vmem [shape: f32[32,128], index: 0, kind: input, shape index: {}]   ;;  %s1081_s1 = inlined_call_operand.vmem [shape: f32[32,128], index: 1, kind: input, shape index: {}]   ;;  %s1082_s2 = inlined_call_operand.vmem [shape: f32[32,128], index: 2, kind: input, shape index: {}]   ;;  %s1083_s3 = inlined_call_operand.vmem [shape: f32[32,128], index: 3, kind: input, shape index: {}]   ;;  %s1084_s4 = inlined_call_operand.vmem [shape: f32[32,1], index: 4, kind: input, shape index: {}]   ;;  %s1085_s5 = inlined_call_operand.vmem [shape: f32[32,1], index: 5, kind: input, shape index: {}]   ;;  %s1086_s6 = inlined_call_operand.vmem [shape: f32[32,1], index: 6, kind: input, shape index: {}]   ;;  %s1087_s7 = inlined_call_operand.vmem [shape: f32[32,1], index: 7, kind: input, shape index: {}]   ;;  %s1088_s8 = inlined_call_operand.vmem [shape: f32[32,1], index: 8, kind: input, shape index: {}]   ;;  %s1089_s9 = inlined_call_operand.vmem [shape: f32[32,1], index: 9, kind: input, shape index: {}]   ;;  %s1090_s10 = inlined_call_operand.vmem [shape: f32[32,32], index: 10, kind: input, shape index: {}]   ;;  %s1091_s11 = inlined_call_operand.vmem [shape: f32[32,32], index: 11, kind: input, shape index: {}]   ;;  %s1092_s12 = inlined_call_operand.hbm [shape: f32[1,1], index: 12, kind: output, shape index: {}]  }
   0x1   :  { %v62_v0 = vld [vmem:[%s1085_s5] sm:$0xff]  ;;  %718 = vset.pattern.permute.xlu1 %v747_v2  ;;  %717 = vset.pattern.permute.xlu0 %v747_v2  ;;  %v63_v3 = vld [vmem:[%s1085_s5 + $0x8] sm:$0xff] }
   0x2   :  { %v58_v1 = vld [vmem:[%s1084_s4] sm:$0xff]  ;;  %117 = vperm.xlu1 %718, %v62_v0   ;;  %v59_v4 = vld [vmem:[%s1084_s4 + $0x8] sm:$0xff] }
   0x3   :  { %84 = vperm.xlu0 %717, %v58_v1   ;;  %v67_v5 = vld [vmem:[%s1086_s6 + $0x8] sm:$0xff]  ;;  %v66_v6 = vld [vmem:[%s1086_s6] sm:$0xff] }
   0x6   :  { %122 = vperm.xlu1 %718, %v63_v3  }
   0x7   :  { %89 = vperm.xlu0 %717, %v59_v4  }
   0x8   :  { %17 = vsyncpa [#allocation3], 0  ;;  %v71_v7 = vld [vmem:[%s1087_s7 + $0x8] sm:$0xff]  ;;  %v70_v8 = vld [vmem:[%s1087_s7] sm:$0xff]  ;;  %vm294_vm0 = vcmask 261120   ;;  %vm621_vm2 = vcmask 0  }
   0x9   :  { %v64_v9 = vld [vmem:[%s1085_s5 + $0x10] sm:$0xff]  ;;  %v65_v13 = vld [vmem:[%s1085_s5 + $0x18] sm:$0xff]  ;;  %v75_v17 = vld [vmem:[%s1088_s8 + $0x8] sm:$0xff] }
   0xa   :  { %155 = vperm.xlu1 %718, %v67_v5   ;;  %v60_v10 = vld [vmem:[%s1084_s4 + $0x10] sm:$0xff]  ;;  %v61_v14 = vld [vmem:[%s1084_s4 + $0x18] sm:$0xff]  ;;  %v74_v18 = vld [vmem:[%s1088_s8] sm:$0xff] }
   0xb   :  { %150 = vperm.xlu0 %717, %v66_v6   ;;  %v72_v11 = vld [vmem:[%s1087_s7 + $0x10] sm:$0xff]  ;;  %v73_v15 = vld [vmem:[%s1087_s7 + $0x18] sm:$0xff]  ;;  %v79_v19 = vld [vmem:[%s1089_s9 + $0x8] sm:$0xff] }
   0xc   :  { %v68_v12 = vld [vmem:[%s1086_s6 + $0x10] sm:$0xff]  ;;  %v69_v16 = vld [vmem:[%s1086_s6 + $0x18] sm:$0xff]  ;;  %v78_v20 = vld [vmem:[%s1089_s9] sm:$0xff] }
   0xd   :  { %v77_v21 = vld [vmem:[%s1088_s8 + $0x18] sm:$0xff]  ;;  %v76_v22 = vld [vmem:[%s1088_s8 + $0x10] sm:$0xff]  ;;  %v290_v25 = vld [vmem:[%s1091_s11] sm:$0xff] }
   0xe   :  { %188 = vperm.xlu1 %718, %v71_v7   ;;  %v81_v23 = vld [vmem:[%s1089_s9 + $0x18] sm:$0xff]  ;;  %v80_v24 = vld [vmem:[%s1089_s9 + $0x10] sm:$0xff]  ;;  %v286_v26 = vld [vmem:[%s1090_s10] sm:$0xff]  ;;  %674 = vmatprep.mubr.msk.f32.mxu1 %vm294_vm0, %v290_v25 }
   0xf   :  { %183 = vperm.xlu0 %717, %v70_v8   ;;  %688 = vmatprep.mubr.msk.f32.mxu0 %vm294_vm0, %v286_v26  ;;  %v898_v35 = vld [vmem:[%s1081_s1 + $0x8] sm:$0xff]  ;;  %v903_v38 = vld [vmem:[%s1082_s2] sm:$0xff]  ;;  %v918_v41 = vld [vmem:[%s1081_s1 + $0x10] sm:$0xff] }
  0x10   :  { %v908_v39 = vld [vmem:[%s1082_s2 + $0x8] sm:$0xff]  ;;  %v913_v40 = vld [vmem:[%s1081_s1] sm:$0xff]  ;;  %v578_v48 = vmul.f32 %v903_v38, %v903_v38  ;;  %v943_v54 = vld [vmem:[%s1080_s0 + $0x10] sm:$0xff] }
  0x11   :  { %v925_v44 = vld [vmem:[%s1080_s0 + $0x8] sm:$0xff]  ;;  %v930_v45 = vld [vmem:[%s1080_s0] sm:$0xff]  ;;  %v579_v49 = vmul.f32 %v908_v39, %v908_v39  ;;  %v948_v55 = vld [vmem:[%s1082_s2 + $0x10] sm:$0xff] }
  0x12   :  { %127 = vperm.xlu1 %718, %v64_v9   ;;  %v957_v60 = vld [vmem:[%s1081_s1 + $0x18] sm:$0xff]  ;;  %v962_v63 = vld [vmem:[%s1083_s3] sm:$0xff]  ;;  %v967_v0 = vld [vmem:[%s1083_s3 + $0x8] sm:$0xff]  ;;  %v580_v5 = vmul.f32 %v948_v55, %v948_v55 }
  0x13   :  { %94 = vperm.xlu0 %717, %v60_v10   ;;  %v582_v6 = vadd.f32 %v579_v49, %v578_v48 }
  0x16   :  { %193 = vperm.xlu1 %718, %v72_v11  }
  0x17   :  { %160 = vperm.xlu0 %717, %v68_v12  }
  0x1a   :  { %132 = vperm.xlu1 %718, %v65_v13   ;;  %v978_v13 = vld [vmem:[%s1080_s0 + $0x18] sm:$0xff] }
  0x1b   :  { %99 = vperm.xlu0 %717, %v61_v14   ;;  %v596_v14 = vmul.f32 %v962_v63, %v962_v63 }
  0x1e   :  { %198 = vperm.xlu1 %718, %v73_v15   ;;  %v597_v15 = vmul.f32 %v967_v0, %v967_v0 }
  0x1f   :  { %165 = vperm.xlu0 %717, %v69_v16  }
  0x22   :  { %233 = vperm.xlu1 %718, %v75_v17  }
  0x23   :  { %228 = vperm.xlu0 %717, %v74_v18   ;;  %v987_v18 = vld [vmem:[%s1082_s2 + $0x18] sm:$0xff] }
  0x26   :  { %269 = vperm.xlu1 %718, %v79_v19   ;;  %v992_v19 = vld [vmem:[%s1083_s3 + $0x10] sm:$0xff] }
  0x27   :  { %264 = vperm.xlu0 %717, %v78_v20  }
  0x2a   :  { %243 = vperm.xlu1 %718, %v77_v21  }
  0x2b   :  { %238 = vperm.xlu0 %717, %v76_v22  }
  0x2e   :  { %279 = vperm.xlu1 %718, %v81_v23  }
  0x2f   :  { %274 = vperm.xlu0 %717, %v80_v24  }
  0x81   :  { %v118_v27 = vpop.permute.xlu1 %117 }
  0x82   :  { %v85_v28 = vpop.permute.xlu0 %84  ;;  %v135_v50 = vmul.f32 %v118_v27, %v913_v40 }
  0x83   :  { %v102_v51 = vmul.f32 %v85_v28, %v913_v40  ;;  %v581_v28 = vmul.f32 %v987_v18, %v987_v18 }
  0x85   :  { %v123_v29 = vpop.permute.xlu1 %122 }
  0x86   :  { %v90_v30 = vpop.permute.xlu0 %89  ;;  %v136_v42 = vmul.f32 %v123_v29, %v898_v35  ;;  %v583_v29 = vadd.f32 %v582_v6, %v580_v5 }
  0x87   :  { %v103_v43 = vmul.f32 %v90_v30, %v898_v35  ;;  %v598_v30 = vmul.f32 %v992_v19, %v992_v19 }
  0x88   :  { %v139_v61 = vadd.f32 %v136_v42, %v135_v50  ;;  %v584_v50 = vadd.f32 %v583_v29, %v581_v28 }
  0x89   :  { %v156_v31 = vpop.permute.xlu1 %155  ;;  %v106_v62 = vadd.f32 %v103_v43, %v102_v51 }
  0x8a   :  { %v151_v32 = vpop.permute.xlu0 %150  ;;  %v169_v56 = vmul.f32 %v156_v31, %v925_v44  ;;  %v600_v31 = vadd.f32 %v597_v15, %v596_v14 }
  0x8b   :  { %v168_v57 = vmul.f32 %v151_v32, %v930_v45 }
  0x8d   :  { %v189_v33 = vpop.permute.xlu1 %188  ;;  %v172_v11 = vadd.f32 %v169_v56, %v168_v57 }
  0x8e   :  { %v184_v34 = vpop.permute.xlu0 %183  ;;  %v202_v58 = vmul.f32 %v189_v33, %v925_v44 }
  0x8f   :  { %v201_v59 = vmul.f32 %v184_v34, %v930_v45 }
  0x91   :  { %v128_v36 = vpop.permute.xlu1 %127  ;;  %v205_v12 = vadd.f32 %v202_v58, %v201_v59 }
  0x92   :  { %v95_v37 = vpop.permute.xlu0 %94  ;;  %v137_v52 = vmul.f32 %v128_v36, %v918_v41 }
  0x93   :  { %v104_v53 = vmul.f32 %v95_v37, %v918_v41  ;;  %v1003_v37 = vld [vmem:[%s1083_s3 + $0x18] sm:$0xff] }
  0x94   :  { %v140_v7 = vadd.f32 %v139_v61, %v137_v52  ;;  %v599_v51 = vmul.f32 %v1003_v37, %v1003_v37  ;;  %v601_v52 = vadd.f32 %v600_v31, %v598_v30 }
  0x95   :  { %v194_v46 = vpop.permute.xlu1 %193  ;;  %v107_v8 = vadd.f32 %v106_v62, %v104_v53 }
  0x96   :  { %v161_v47 = vpop.permute.xlu0 %160  ;;  %v203_v1 = vmul.f32 %v194_v46, %v943_v54  ;;  %v602_v5 = vadd.f32 %v601_v52, %v599_v51 }
  0x97   :  { %v170_v2 = vmul.f32 %v161_v47, %v943_v54 }
  0x98   :  { %v206_v20 = vadd.f32 %v205_v12, %v203_v1 }
  0x99   :  { %v133_v3 = vpop.permute.xlu1 %132  ;;  %v173_v21 = vadd.f32 %v172_v11, %v170_v2 }
  0x9a   :  { %v100_v4 = vpop.permute.xlu0 %99  ;;  %v138_v9 = vmul.f32 %v133_v3, %v957_v60 }
  0x9b   :  { %v105_v10 = vmul.f32 %v100_v4, %v957_v60  ;;  %v585_v4 = vrot.slane %v584_v50, 4 }
  0x9c   :  { %v141_v16 = vadd.f32 %v140_v7, %v138_v9 }
  0x9d   :  { %v108_v17 = vadd.f32 %v107_v8, %v105_v10  ;;  %v199_v22 = vpop.permute.xlu1 %198  ;;  %v1009_v15 = vadd.f32 %v585_v4, %v584_v50 }
  0x9e   :  { %v166_v23 = vpop.permute.xlu0 %165  ;;  %v142_v24 = vrot.slane %v141_v16, 4  ;;  %v204_v26 = vmul.f32 %v199_v22, %v978_v13 }
  0x9f   :  { %v109_v25 = vrot.slane %v108_v17, 4  ;;  %v171_v27 = vmul.f32 %v166_v23, %v978_v13 }
  0xa0   :  { %v143_v32 = vadd.f32 %v142_v24, %v141_v16  ;;  %v207_v34 = vadd.f32 %v206_v20, %v204_v26  ;;  %v603_v16 = vrot.slane %v602_v5, 4 }
  0xa1   :  { %v110_v33 = vadd.f32 %v109_v25, %v108_v17  ;;  %v174_v36 = vadd.f32 %v173_v21, %v171_v27  ;;  %v234_v42 = vpop.permute.xlu1 %233 }
  0xa2   :  { %v229_v43 = vpop.permute.xlu0 %228  ;;  %v144_v46 = vrot.slane %v143_v32, 2  ;;  %v208_v48 = vrot.slane %v207_v34, 4 }
  0xa3   :  { %v111_v47 = vrot.slane %v110_v33, 2  ;;  %v175_v49 = vrot.slane %v174_v36, 4 }
  0xa4   :  { %v145_v53 = vadd.f32 %v144_v46, %v143_v32  ;;  %v209_v57 = vadd.f32 %v208_v48, %v207_v34 }
  0xa5   :  { %v112_v56 = vadd.f32 %v111_v47, %v110_v33  ;;  %v176_v58 = vadd.f32 %v175_v49, %v174_v36  ;;  %v270_v2 = vpop.permute.xlu1 %269 }
  0xa6   :  { %v146_v59 = vrot.slane %v145_v53, 1  ;;  %v210_v62 = vrot.slane %v209_v57, 2  ;;  %v265_v3 = vpop.permute.xlu0 %264 }
  0xa7   :  { %v113_v61 = vrot.slane %v112_v56, 1  ;;  %v177_v1 = vrot.slane %v176_v58, 2 }
  0xa8   :  { %v147_v6 = vadd.f32 %v146_v59, %v145_v53  ;;  %v211_v8 = vadd.f32 %v210_v62, %v209_v57 }
  0xa9   :  { %v114_v7 = vadd.f32 %v113_v61, %v112_v56  ;;  %v178_v9 = vadd.f32 %v177_v1, %v176_v58  ;;  %v244_v23 = vpop.permute.xlu1 %243 }
  0xaa   :  { %v212_v10 = vrot.slane %v211_v8, 1  ;;  %v251_v21 = vmul.f32 %v147_v6, %v925_v44  ;;  %v250_v22 = vmul.f32 %v147_v6, %v930_v45  ;;  %v239_v24 = vpop.permute.xlu0 %238  ;;  %v253_v27 = vmul.f32 %v147_v6, %v978_v13 }
  0xab   :  { %v179_v11 = vrot.slane %v178_v9, 1  ;;  %v215_v12 = vmul.f32 %v114_v7, %v925_v44  ;;  %v214_v14 = vmul.f32 %v114_v7, %v930_v45  ;;  %v217_v25 = vmul.f32 %v114_v7, %v978_v13 }
  0xac   :  { %v213_v17 = vadd.f32 %v212_v10, %v211_v8  ;;  %v216_v26 = vmul.f32 %v114_v7, %v943_v54  ;;  %v252_v28 = vmul.f32 %v147_v6, %v943_v54 }
  0xad   :  { %v180_v20 = vadd.f32 %v179_v11, %v178_v9  ;;  %v280_v53 = vpop.permute.xlu1 %279 }
  0xae   :  { %v219_v29 = vmul.f32 %v213_v17, %v898_v35  ;;  %v218_v30 = vmul.f32 %v213_v17, %v913_v40  ;;  %v221_v45 = vmul.f32 %v213_v17, %v957_v60  ;;  %v220_v32 = vmul.f32 %v213_v17, %v918_v41  ;;  %v275_v56 = vpop.permute.xlu0 %274 }
  0xaf   :  { %v255_v31 = vmul.f32 %v180_v20, %v898_v35  ;;  %v254_v44 = vmul.f32 %v180_v20, %v913_v40  ;;  %v257_v33 = vmul.f32 %v180_v20, %v957_v60  ;;  %v256_v34 = vmul.f32 %v180_v20, %v918_v41 }
  0xb0   :  { %v223_v36 = vadd.f32 %v219_v29, %v215_v12  ;;  %v222_v13 = vadd.f32 %v218_v30, %v214_v14  ;;  %v225_v47 = vadd.f32 %v221_v45, %v217_v25  ;;  %v224_v48 = vadd.f32 %v220_v32, %v216_v26  ;;  %v287_v26 = vld [vmem:[%s1090_s10 + $0x8] sm:$0xff]  ;;  %v292_v29 = vld [vmem:[%s1091_s11 + $0x10] sm:$0xff] }
  0xb1   :  { %v259_v46 = vadd.f32 %v255_v31, %v251_v21  ;;  %v258_v54 = vadd.f32 %v254_v44, %v250_v22  ;;  %v261_v49 = vadd.f32 %v257_v33, %v253_v27  ;;  %v260_v50 = vadd.f32 %v256_v34, %v252_v28  ;;  %v293_v33 = vld [vmem:[%s1091_s11 + $0x18] sm:$0xff] }
  0xb2   :  { %v247_v51 = vadd.f32 %v234_v42, %v223_v36  ;;  %v246_v35 = vadd.f32 %v229_v43, %v222_v13  ;;  %v249_v57 = vadd.f32 %v244_v23, %v225_v47  ;;  %v248_v58 = vadd.f32 %v239_v24, %v224_v48  ;;  %v289_v34 = vld [vmem:[%s1090_s10 + $0x18] sm:$0xff] }
  0xb3   :  { %v283_v52 = vadd.f32 %v270_v2, %v259_v46  ;;  %v282_v40 = vadd.f32 %v265_v3, %v258_v54  ;;  %v285_v59 = vadd.f32 %v280_v53, %v261_v49  ;;  %v284_v60 = vadd.f32 %v275_v56, %v260_v50 }
  0xb4   :  { %v544_v61 = vmul.f32 %v247_v51, %v247_v51  ;;  %v543_v41 = vmul.f32 %v246_v35, %v246_v35  ;;  %v545_v7 = vmul.f32 %v248_v58, %v248_v58  ;;  %v702_v10 = vpack.c.bf16 %v247_v51, %v246_v35 }
  0xb5   :  { %v561_v62 = vmul.f32 %v283_v52, %v283_v52  ;;  %v560_v1 = vmul.f32 %v282_v40, %v282_v40  ;;  %v562_v8 = vmul.f32 %v284_v60, %v284_v60  ;;  %v694_v9 = vpack.c.bf16 %v283_v52, %v282_v40 }
  0xb6   :  { %v547_v4 = vadd.f32 %v544_v61, %v543_v41  ;;  %v587_v42 = vrot.slane %v1009_v15, 2  ;;  %v604_v43 = vadd.f32 %v603_v16, %v602_v5  ;;  %v546_v2 = vmul.f32 %v249_v57, %v249_v57  ;;  %703 = vmatprep.subr.bf16.mxu0 %v702_v10  ;;  %v291_v16 = vld [vmem:[%s1091_s11 + $0x8] sm:$0xff] }
  0xb7   :  { %v564_v6 = vadd.f32 %v561_v62, %v560_v1  ;;  %v563_v11 = vmul.f32 %v285_v59, %v285_v59  ;;  %v706_v14 = vpack.c.bf16 %v249_v57, %v248_v58  ;;  %v698_v17 = vpack.c.bf16 %v285_v59, %v284_v60  ;;  %695 = vmatprep.subr.bf16.mxu1 %v694_v9 }
  0xb8   :  { %v548_v3 = vadd.f32 %v547_v4, %v545_v7  ;;  %697 = vmatpush3.bf16.msra.mxu1 %v694_v9  ;;  %705 = vmatpush3.bf16.msra.mxu0 %v702_v10  ;;  %v531_v22 = vlaneseq  ;;  %v588_v25 = vadd.f32 %v587_v42, %v1009_v15  ;;  %v605_v5 = vrot.slane %v604_v43, 2  ;;  %v288_v15 = vld [vmem:[%s1090_s10 + $0x10] sm:$0xff]  ;;  %s749_s10 = smov [#allocation2]  }
  0xb9   :  { %v565_v12 = vadd.f32 %v564_v6, %v562_v8  ;;  %699 = vmatprep.subr.bf16.mxu1 %v698_v17  ;;  %707 = vmatprep.subr.bf16.mxu0 %v706_v14  ;;  %v748_v51 = vmov 0.0   ;;  %s633_s11 = sshll.u32 %s749_s10, 4  ;;  %s634_s11 = int_to_ptr.vmem [resolvable:$true] %s633_s11 }
  0xba   :  { %v549_v20 = vadd.f32 %v548_v3, %v546_v2  ;;  %v532_v30 = vand.u32 127, %v531_v22  ;;  %v589_v45 = vrot.slane %v588_v25, 1  ;;  %v606_v32 = vadd.f32 %v605_v5, %v604_v43  ;;  %622 = vst.msk [vmem:[#allocation2] sm:$0x1] %vm621_vm2, %v748_v51  ;;  %s723_s25 = scalar_lea.vmem %s634_s11, 16  ;;  %s727_s26 = scalar_lea.vmem %s634_s11, 32 }
  0xbb   :  { %v566_v21 = vadd.f32 %v565_v12, %v563_v11  ;;  %p724_p0 = scmp.ne.s32.totalorder %s634_s11, %s723_s25  ;;  %p728_p1 = scmp.lt.s32.totalorder %s634_s11, %s634_s11 }
  0xbc   :  { %v550_v23 = vrot.slane %v549_v20, 4  ;;  %701 = vmatpush3.bf16.msra.mxu1 %v698_v17  ;;  %709 = vmatpush3.bf16.msra.mxu0 %v706_v14  ;;  %vm536_vm1 = vcmp.lt.s32.totalorder %v532_v30, 8  ;;  %v590_v47 = vadd.f32 %v589_v45, %v588_v25  ;;  %v607_v48 = vrot.slane %v606_v32, 1  ;;  %p729_p2 = scmp.lt.s32.totalorder %s727_s26, %s723_s25 }
  0xbd   :  { %v567_v24 = vrot.slane %v566_v21, 4  ;;  %v1051_v35 = vsel %vm536_vm1, 1.0, %v748_v51 }
  0xbe   :  { %v551_v27 = vadd.f32 %v550_v23, %v549_v20  ;;  %v591_v53 = vmul.f32 0.5, %v590_v47  ;;  %v608_v56 = vadd.f32 %v607_v48, %v606_v32  ;;  %p730_p3 = por %p729_p2, %p728_p1 }
  0xbf   :  { %v568_v28 = vadd.f32 %v567_v24, %v566_v21  ;;  %675 = vmatmul.mubr.msk.f32.vlgmr.msra.gmra.mrb[0].mxu1 %vm294_vm0, %v291_v16  ;;  %689 = vmatmul.mubr.msk.f32.vlgmr.msra.gmra.mrb[0].mxu0 %vm294_vm0, %v287_v26 }
  0xc0   :  { %v552_v31 = vrot.slane %v551_v27, 2  ;;  %677 = vmatprep.mubr.msk.f32.mxu1 %vm294_vm0, %v292_v29  ;;  %691 = vmatprep.mubr.msk.f32.mxu0 %vm294_vm0, %v288_v15  ;;  %v592_v59 = vmul.f32 %v1051_v35, %v591_v53  ;;  %v609_v60 = vmul.f32 0.5, %v608_v56  ;;  %p731_p4 = pnand %p730_p3, %p724_p0 }
  0xc1   :  { %v569_v44 = vrot.slane %v568_v28, 2 }
  0xc2   :  { %v553_v36 = vadd.f32 %v552_v31, %v551_v27  ;;  %v610_v61 = vmul.f32 %v1051_v35, %v609_v60 }
  0xc3   :  { %v570_v13 = vadd.f32 %v569_v44, %v568_v28  ;;  %678 = vmatmul.mubr.msk.f32.gmra.mrb[2].mxu1 %vm294_vm0, %v293_v33  ;;  %692 = vmatmul.mubr.msk.f32.gmra.mrb[2].mxu0 %vm294_vm0, %v289_v34 }
  0xc4   :  { %v554_v46 = vrot.slane %v553_v36, 1 }
  0xc5   :  { %v571_v54 = vrot.slane %v570_v13, 1 }
  0xc6   :  { %v555_v49 = vadd.f32 %v554_v46, %v553_v36 }
  0xc7   :  { %v572_v50 = vadd.f32 %v571_v54, %v570_v13 }
  0xc8   :  { %v556_v52 = vmul.f32 0.5, %v555_v49 }
  0xc9   :  { %v573_v40 = vmul.f32 0.5, %v572_v50 }
  0xca   :  { %v557_v57 = vmul.f32 %v1051_v35, %v556_v52 }
  0xcb   :  { %v574_v58 = vmul.f32 %v1051_v35, %v573_v40 }
  0xcc   :  { %558 = vadd.xlane.f32.xlu0 %v557_v57 }
  0xcd   :  { %575 = vadd.xlane.f32.xlu1 %v574_v58 }
  0xd0   :  { %593 = vadd.xlane.f32.xlu0 %v592_v59 }
  0xd4   :  { %611 = vadd.xlane.f32.xlu0 %v610_v61 }
 0x159   :  { %v559_v40 = vpop.xlane.xlu0 %558 }
 0x15a   :  { %v576_v56 = vpop.xlane.xlu1 %575 }
 0x15b   :  { %v577_v57 = vadd.f32 %v576_v56, %v559_v40 }
 0x15d   :  { %v594_v53 = vpop.xlane.xlu0 %593 }
 0x15e   :  { %v595_v59 = vadd.f32 %v594_v53, %v577_v57 }
 0x161   :  { %v612_v58 = vpop.xlane.xlu0 %611 }
 0x162   :  { %v613_v60 = vadd.f32 %v612_v58, %v595_v59 }
 0x164   :  { %v614_v61 = vmul.f32 1e-05, %v613_v60 }
 0x192   :  { %v676_v41 = vpop.f32.mrb[0].mxu1  ;;  %v690_v62 = vpop.f32.mrb[0].mxu0 }
 0x193   :  { %v476_v1 = vadd.f32 %v690_v62, %v676_v41  ;;  %v373_v4 = vpop.f32.mrb[1].mxu1  ;;  %v470_v6 = vpop.f32.mrb[1].mxu0 }
 0x194   :  { %v471_v7 = vadd.f32 %v470_v6, %v373_v4 }
 0x195   :  { %v490_v8 = vmul.f32 %v476_v1, %v908_v39  ;;  %v503_v9 = vmul.f32 %v476_v1, %v967_v0  ;;  %v623_v1 = vld [vmem:[#allocation2] sm:$0x1] }
 0x196   :  { %v489_v10 = vmul.f32 %v471_v7, %v903_v38  ;;  %v502_v42 = vmul.f32 %v471_v7, %v962_v63  ;;  %v679_v43 = vpop.f32.mrb[2].mxu1  ;;  %v693_v2 = vpop.f32.mrb[2].mxu0 }
 0x197   :  { %v486_v3 = vadd.f32 %v693_v2, %v679_v43  ;;  %v383_v11 = vpop.f32.mrb[3].mxu1  ;;  %v480_v12 = vpop.f32.mrb[3].mxu0 }
 0x198   :  { %v493_v14 = vadd.f32 %v490_v8, %v489_v10  ;;  %v506_v17 = vadd.f32 %v503_v9, %v502_v42  ;;  %v481_v20 = vadd.f32 %v480_v12, %v383_v11 }
 0x199   :  { %v492_v39 = vmul.f32 %v486_v3, %v987_v18  ;;  %v505_v0 = vmul.f32 %v486_v3, %v1003_v37 }
 0x19a   :  { %v491_v21 = vmul.f32 %v481_v20, %v948_v55  ;;  %v504_v22 = vmul.f32 %v481_v20, %v992_v19 }
 0x19c   :  { %v494_v23 = vadd.f32 %v493_v14, %v491_v21  ;;  %v507_v38 = vadd.f32 %v506_v17, %v504_v22 }
 0x19e   :  { %v495_v24 = vadd.f32 %v494_v23, %v492_v39  ;;  %v508_v63 = vadd.f32 %v507_v38, %v505_v0 }
 0x1a0   :  { %v496_v25 = vrot.slane %v495_v24, 4  ;;  %v509_v5 = vrot.slane %v508_v63, 4 }
 0x1a2   :  { %v497_v16 = vadd.f32 %v496_v25, %v495_v24  ;;  %v510_v26 = vadd.f32 %v509_v5, %v508_v63 }
 0x1a4   :  { %v498_v27 = vrot.slane %v497_v16, 2  ;;  %v511_v28 = vrot.slane %v510_v26, 2 }
 0x1a6   :  { %v499_v29 = vadd.f32 %v498_v27, %v497_v16  ;;  %v512_v15 = vadd.f32 %v511_v28, %v510_v26 }
 0x1a8   :  { %v500_v30 = vrot.slane %v499_v29, 1  ;;  %v513_v55 = vrot.slane %v512_v15, 1 }
 0x1aa   :  { %v501_v31 = vadd.f32 %v500_v30, %v499_v29  ;;  %v514_v19 = vadd.f32 %v513_v55, %v512_v15 }
 0x1ac   :  { %v515_v44 = vsub.f32 %v501_v31, %v514_v19 }
 0x1ae   :  { %v517_v18 = vand.u32 2147483647, %v515_v44  ;;  %v516_v48 = vmin.f32 %v515_v44, 0.0 }
 0x1b0   :  { %v518_v45 = vsub.f32 0.0, %v517_v18 }
 0x1b2   :  { %v519_v37 = vmul.f32 1.442695, %v518_v45 }
 0x1b4   :  { %719 = vpow2.f32 %v519_v37 }
 0x1be   :  { %v720_v32 = vpop.eup %719 }
 0x1bf   :  { %v521_v33 = vadd.f32 1.0, %v720_v32  ;;  %v524_v34 = vmul.f32 -0.5, %v720_v32  ;;  %v527_v13 = vand.u32 2147483647, %v720_v32 }
 0x1c1   :  { %721 = vlog2.f32 %v521_v33  ;;  %v525_v36 = vadd.f32 1.0, %v524_v34  ;;  %vm528_vm3 = vcmp.lt.f32.partialorder %v527_v13, 0.0004427343 }
 0x1c3   :  { %v526_v47 = vmul.f32 %v720_v32, %v525_v36 }
 0x1cb   :  { %v722_v46 = vpop.eup %721 }
 0x1cc   :  { %v523_v54 = vmul.f32 0.6931472, %v722_v46 }
 0x1ce   :  { %v529_v49 = vsel %vm528_vm3, %v526_v47, %v523_v54 }
 0x1cf   :  { %v530_v50 = vsub.f32 %v516_v48, %v529_v49 }
 0x1d1   :  { %v539_v51 = vsub.f32 0.0, %v530_v50 }
 0x1d3   :  { %v540_v52 = vmul.f32 %v1051_v35, %v539_v51 }
 0x1d5   :  { %541 = vadd.xlane.f32.xlu1 %v540_v52 }
 0x262   :  { %v542_v41 = vpop.xlane.xlu1 %541 }
 0x263   :  { %v615_v62 = vadd.f32 %v614_v61, %v542_v41 }
 0x265   :  { %v616_v4 = vmul.f32 0.125, %v615_v62 }
 0x267   :  { %v624_v6 = vadd.f32 %v623_v1, %v616_v4 }
 0x269   :  { %626 = vst.msk [vmem:[#allocation2] sm:$0x1] %vm621_vm2, %v624_v6 }
 0x26a   :  { %734 = shalt.err (!%p731_p4)
}
 0x26b   :  { %s735_s29 = scalar_lea.hbm %s1092_s12, 16 }
 0x26c   :  { %p736_p5 = scmp.ne.s32.totalorder %s1092_s12, %s735_s29  ;;  %p739_p6 = scmp.lt.u32.totalorder %s735_s29, %s1092_s12 }
 0x26e   :  { %p741_p7 = pnand %p739_p6, %p736_p5 }
 0x270   :  { %744 = shalt.err (!%p741_p7)
}
 0x271   :  { %636 = dma.vmem_to_hbm [thread:$0]  %s634_s11, 16, %s1092_s12, [#allocation3]  }
 0x272   :  { %745 = dma.done.wait [#allocation3], 16  }
 0x273   :  { %746 = vsyncadd [#allocation3], 4294967280 }
 0x274   :  { %640 = vsyncpa [#allocation3], 1 }

</bundles_post_ra>
